<compile_context>
chip_gen: v5e
topology: v5e:2x2
jax: 0.10.0
libtpu: 0.0.40
codegen_flags: <defaults>
</compile_context>

<pallas_src>
import functools

import jax
import jax.numpy as jnp
from jax.experimental import pallas as pl
from jax.experimental.pallas import tpu as pltpu

F32 = jnp.float32
BF16 = jnp.bfloat16
_LN_EPS = 1e-5


def _device_vmem_bytes():
    try:
        return int(pltpu.get_tpu_info().vmem_capacity_bytes)
    except Exception:
        return 64 * 1024 * 1024  # conservative fallback (v7x-sized)


_VMEM_CAP = _device_vmem_bytes()
_BIG_VMEM = _VMEM_CAP >= 128 * 1024 * 1024          # v5e / v6e
_VMEM_LIMIT = 64 * 1024 * 1024 if _BIG_VMEM else 32 * 1024 * 1024
_ROW_CAP = 1024 if _BIG_VMEM else 512               # row-tiled kernels
_ATTN_Q_CAP = 256                                   # query-tile for attention


def _cparams(n_axes):
    return pltpu.CompilerParams(
        dimension_semantics=("parallel",) * n_axes,
        vmem_limit_bytes=_VMEM_LIMIT,
    )


def _tile(n, cap):
    # Full extent if it fits (block == full dim is always legal); otherwise a
    # cap that is a multiple of 8 (sublane) so tiled blocks stay aligned.
    return n if n <= cap else cap


# ----------------------------------------------------------------------------
# Kernel bodies (all matmul operands are bf16, f32 accumulate; softmax /
# LayerNorm math in f32).
# ----------------------------------------------------------------------------
def _self_proj_kernel(x_ref, pos_ref, wqk_ref, bqk_ref, wv_ref, bv_ref,
                      q_ref, kv_ref, *, hdk):
    """q  = (x+pos) @ Wq            (first half of fused Wqk)
       kv = [(x+pos) @ Wk | x @ Wv] (second half of Wqk, plus V from raw x)."""
    x = x_ref[...].astype(F32)
    xp = (x + pos_ref[...].astype(F32)).astype(BF16)
    qk = jnp.dot(xp, wqk_ref[...], preferred_element_type=F32) + bqk_ref[...]
    v = jnp.dot(x.astype(BF16), wv_ref[...], preferred_element_type=F32) + bv_ref[...]
    q_ref[...] = qk[:, :hdk].astype(q_ref.dtype)
    kv_ref[:, :hdk] = qk[:, hdk:].astype(kv_ref.dtype)
    kv_ref[:, hdk:] = v.astype(kv_ref.dtype)


def _q_proj_kernel(x_ref, pos_ref, w_ref, b_ref, o_ref):
    xp = (x_ref[...].astype(F32) + pos_ref[...].astype(F32)).astype(BF16)
    o_ref[...] = (jnp.dot(xp, w_ref[...], preferred_element_type=F32)
                  + b_ref[...]).astype(o_ref.dtype)


def _kv_proj_kernel(x_ref, pos_ref, wk_ref, bk_ref, wv_ref, bv_ref, o_ref, *, hdk):
    x = x_ref[...].astype(F32)
    xp = (x + pos_ref[...].astype(F32)).astype(BF16)
    k = jnp.dot(xp, wk_ref[...], preferred_element_type=F32) + bk_ref[...]
    v = jnp.dot(x.astype(BF16), wv_ref[...], preferred_element_type=F32) + bv_ref[...]
    o_ref[:, :hdk] = k.astype(o_ref.dtype)
    o_ref[:, hdk:] = v.astype(o_ref.dtype)


def _attn_kernel(q_ref, kv_ref, res_ref, wo_ref, bo_ref, g_ref, b_ref, o_ref,
                 *, Nh, dk, dv, scale, eps):
    """All heads for one (batch, q-tile): softmax(QK^T)V, concat heads, one Wo
    matmul, residual add, LayerNorm.  K/V are fully resident, so no online
    softmax is needed."""
    hdk = Nh * dk
    q = q_ref[...].astype(F32) * scale            # pre-scale Q (cheaper than scores)
    kv = kv_ref[...]                              # bf16
    heads = []
    for h in range(Nh):
        qh = q[:, h * dk:(h + 1) * dk].astype(BF16)
        kh = kv[:, h * dk:(h + 1) * dk]
        vh = kv[:, hdk + h * dv: hdk + (h + 1) * dv]
        s = jax.lax.dot_general(qh, kh, (((1,), (1,)), ((), ())),
                                preferred_element_type=F32)
        s = s - jnp.max(s, axis=-1, keepdims=True)
        p = jnp.exp(s)
        # NOTE: approx reciprocal (EUP) -> rows sum to 1 only to ~1e-3; fine
        # for inference, switch to exact division for tight parity checks.
        p = p * pl.reciprocal(jnp.sum(p, axis=-1, keepdims=True), approx=True)
        heads.append(jnp.dot(p.astype(BF16), vh, preferred_element_type=F32))
    concat = jnp.concatenate(heads, axis=-1).astype(BF16)        # [tq, Nh*dv]
    proj = jnp.dot(concat, wo_ref[...], preferred_element_type=F32)
    y = res_ref[...].astype(F32) + proj + bo_ref[...]
    mu = jnp.mean(y, axis=-1, keepdims=True)
    var = jnp.mean((y - mu) ** 2, axis=-1, keepdims=True)
    o_ref[...] = (((y - mu) * jax.lax.rsqrt(var + eps)) * g_ref[...]
                  + b_ref[...]).astype(o_ref.dtype)


def _ffn_res_ln_kernel(x_ref, w1_ref, b1_ref, w2_ref, b2_ref, g_ref, bt_ref, o_ref,
                       *, eps):
    x = x_ref[...]
    h = jnp.dot(x, w1_ref[...], preferred_element_type=F32) + b1_ref[...]
    h = jnp.maximum(h, 0.0)
    f = jnp.dot(h.astype(BF16), w2_ref[...], preferred_element_type=F32) + b2_ref[...]
    y = x.astype(F32) + f
    mu = jnp.mean(y, axis=-1, keepdims=True)
    var = jnp.mean((y - mu) ** 2, axis=-1, keepdims=True)
    o_ref[...] = (((y - mu) * jax.lax.rsqrt(var + eps)) * g_ref[...]
                  + bt_ref[...]).astype(o_ref.dtype)


def _ln_kernel(x_ref, g_ref, b_ref, o_ref, *, eps):
    x = x_ref[...].astype(F32)
    mu = jnp.mean(x, axis=-1, keepdims=True)
    var = jnp.mean((x - mu) ** 2, axis=-1, keepdims=True)
    o_ref[...] = (((x - mu) * jax.lax.rsqrt(var + eps)) * g_ref[...]
                  + b_ref[...]).astype(o_ref.dtype)


# ----------------------------------------------------------------------------
# pallas_call wrappers
# ----------------------------------------------------------------------------
def self_proj(x, pos, pa, cfg):
    """x: [B, S, d] bf16, pos: [S, d] bf16 -> (q [B,S,Hdk], kv [B,S,Hdk+Hdv])."""
    B, S, d = x.shape
    hdk = cfg["Nh"] * cfg["dk"]
    hdv = cfg["Nh"] * cfg["dv"]
    t = _tile(S, _ROW_CAP)
    return pl.pallas_call(
        functools.partial(_self_proj_kernel, hdk=hdk),
        out_shape=(jax.ShapeDtypeStruct((B, S, hdk), BF16),
                   jax.ShapeDtypeStruct((B, S, hdk + hdv), BF16)),
        grid=(B, pl.cdiv(S, t)),
        in_specs=[
            pl.BlockSpec((None, t, d), lambda b, i: (b, i, 0)),
            pl.BlockSpec((t, d), lambda b, i: (i, 0)),
            pl.BlockSpec((d, 2 * hdk), lambda b, i: (0, 0)),
            pl.BlockSpec((1, 2 * hdk), lambda b, i: (0, 0)),
            pl.BlockSpec((d, hdv), lambda b, i: (0, 0)),
            pl.BlockSpec((1, hdv), lambda b, i: (0, 0)),
        ],
        out_specs=(pl.BlockSpec((None, t, hdk), lambda b, i: (b, i, 0)),
                   pl.BlockSpec((None, t, hdk + hdv), lambda b, i: (b, i, 0))),
        compiler_params=_cparams(2),
    )(x, pos, pa["Wqk"], pa["bqk"], pa["Wv"], pa["bv"])


def q_proj(x, pos, w, b):
    """x: [B, N, d] bf16, pos: [N, d] bf16 -> [B, N, Hdk] bf16."""
    B, N, d = x.shape
    dout = w.shape[1]
    t = _tile(N, _ROW_CAP)
    return pl.pallas_call(
        _q_proj_kernel,
        out_shape=jax.ShapeDtypeStruct((B, N, dout), BF16),
        grid=(B, pl.cdiv(N, t)),
        in_specs=[
            pl.BlockSpec((None, t, d), lambda b, i: (b, i, 0)),
            pl.BlockSpec((t, d), lambda b, i: (i, 0)),
            pl.BlockSpec((d, dout), lambda b, i: (0, 0)),
            pl.BlockSpec((1, dout), lambda b, i: (0, 0)),
        ],
        out_specs=pl.BlockSpec((None, t, dout), lambda b, i: (b, i, 0)),
        compiler_params=_cparams(2),
    )(x, pos, w, b)


def kv_proj(x, pos, pc, cfg):
    """x: [B, S, d] bf16 (memory), pos: [S, d] bf16 -> [B, S, Hdk+Hdv] bf16."""
    B, S, d = x.shape
    hdk = cfg["Nh"] * cfg["dk"]
    hdv = cfg["Nh"] * cfg["dv"]
    t = _tile(S, _ROW_CAP)
    return pl.pallas_call(
        functools.partial(_kv_proj_kernel, hdk=hdk),
        out_shape=jax.ShapeDtypeStruct((B, S, hdk + hdv), BF16),
        grid=(B, pl.cdiv(S, t)),
        in_specs=[
            pl.BlockSpec((None, t, d), lambda b, i: (b, i, 0)),
            pl.BlockSpec((t, d), lambda b, i: (i, 0)),
            pl.BlockSpec((d, hdk), lambda b, i: (0, 0)),
            pl.BlockSpec((1, hdk), lambda b, i: (0, 0)),
            pl.BlockSpec((d, hdv), lambda b, i: (0, 0)),
            pl.BlockSpec((1, hdv), lambda b, i: (0, 0)),
        ],
        out_specs=pl.BlockSpec((None, t, hdk + hdv), lambda b, i: (b, i, 0)),
        compiler_params=_cparams(2),
    )(x, pos, pc["Wk"], pc["bk"], pc["Wv"], pc["bv"])


def attention_block(q, kv, res, Wo, bo, g, beta, cfg):
    """LN(res + MHA(q, kv) @ Wo + bo), tiled over (batch, query-rows)."""
    B, Sq, hdk = q.shape
    Skv, dkv = kv.shape[1], kv.shape[2]
    d = res.shape[-1]
    Nh, dk, dv = cfg["Nh"], cfg["dk"], cfg["dv"]
    tq = _tile(Sq, _ATTN_Q_CAP)
    kern = functools.partial(_attn_kernel, Nh=Nh, dk=dk, dv=dv,
                             scale=1.0 / float(dk) ** 0.5, eps=_LN_EPS)
    return pl.pallas_call(
        kern,
        out_shape=jax.ShapeDtypeStruct((B, Sq, d), BF16),
        grid=(B, pl.cdiv(Sq, tq)),
        in_specs=[
            pl.BlockSpec((None, tq, hdk), lambda b, i: (b, i, 0)),
            pl.BlockSpec((None, Skv, dkv), lambda b, i: (b, 0, 0)),   # K/V resident
            pl.BlockSpec((None, tq, d), lambda b, i: (b, i, 0)),
            pl.BlockSpec((Nh * dv, d), lambda b, i: (0, 0)),
            pl.BlockSpec((1, d), lambda b, i: (0, 0)),
            pl.BlockSpec((1, d), lambda b, i: (0, 0)),
            pl.BlockSpec((1, d), lambda b, i: (0, 0)),
        ],
        out_specs=pl.BlockSpec((None, tq, d), lambda b, i: (b, i, 0)),
        compiler_params=_cparams(2),
    )(q, kv, res, Wo, bo, g, beta)


def ffn_res_ln(x, pf, pln):
    """x: [R, d] bf16 -> LN(x + relu(x@W1+b1)@W2+b2) [R, d] bf16."""
    R, d = x.shape
    dff = pf["W1"].shape[1]
    t = _tile(R, _ROW_CAP)
    return pl.pallas_call(
        functools.partial(_ffn_res_ln_kernel, eps=_LN_EPS),
        out_shape=jax.ShapeDtypeStruct((R, d), BF16),
        grid=(pl.cdiv(R, t),),
        in_specs=[
            pl.BlockSpec((t, d), lambda i: (i, 0)),
            pl.BlockSpec((d, dff), lambda i: (0, 0)),
            pl.BlockSpec((1, dff), lambda i: (0, 0)),
            pl.BlockSpec((dff, d), lambda i: (0, 0)),
            pl.BlockSpec((1, d), lambda i: (0, 0)),
            pl.BlockSpec((1, d), lambda i: (0, 0)),
            pl.BlockSpec((1, d), lambda i: (0, 0)),
        ],
        out_specs=pl.BlockSpec((t, d), lambda i: (i, 0)),
        compiler_params=_cparams(1),
    )(x, pf["W1"], pf["b1"], pf["W2"], pf["b2"], pln["g"], pln["b"])


def layernorm(x, pln, out_dtype):
    R, d = x.shape
    t = _tile(R, _ROW_CAP)
    return pl.pallas_call(
        functools.partial(_ln_kernel, eps=_LN_EPS),
        out_shape=jax.ShapeDtypeStruct((R, d), out_dtype),
        grid=(pl.cdiv(R, t),),
        in_specs=[
            pl.BlockSpec((t, d), lambda i: (i, 0)),
            pl.BlockSpec((1, d), lambda i: (0, 0)),
            pl.BlockSpec((1, d), lambda i: (0, 0)),
        ],
        out_specs=pl.BlockSpec((t, d), lambda i: (i, 0)),
        compiler_params=_cparams(1),
    )(x, pln["g"], pln["b"])


# ----------------------------------------------------------------------------
# Module composition (glue in plain JAX; activations stay bf16 between kernels)
# ----------------------------------------------------------------------------
def encoder_layer(x, pos, p, cfg):
    # DETR-style: positional encodings added to q,k (not v); post-norm.
    B, S, d = x.shape
    pa = p["attn"]
    q, kv = self_proj(x, pos, pa, cfg)
    x = attention_block(q, kv, x, pa["Wo"], pa["bo"],
                        p["ln1"]["g"], p["ln1"]["b"], cfg)
    x = ffn_res_ln(x.reshape(B * S, d), p["ffn"], p["ln2"]).reshape(B, S, d)
    return x


def decoder_layer(tgt, qpos, mem, pos, p, cfg):
    B, N, d = tgt.shape

    # self-attention over object queries
    ps = p["self_attn"]
    q, kv = self_proj(tgt, qpos, ps, cfg)
    tgt = attention_block(q, kv, tgt, ps["Wo"], ps["bo"],
                          p["ln1"]["g"], p["ln1"]["b"], cfg)

    # cross-attention: q from (tgt + qpos), k from (mem + pos), v from mem
    pc = p["cross_attn"]
    qc = q_proj(tgt, qpos, pc["Wq"], pc["bq"])
    kvc = kv_proj(mem, pos, pc, cfg)
    tgt = attention_block(qc, kvc, tgt, pc["Wo"], pc["bo"],
                          p["ln2"]["g"], p["ln2"]["b"], cfg)

    # FFN + residual + LN
    tgt = ffn_res_ln(tgt.reshape(B * N, d), p["ffn"], p["ln3"]).reshape(B, N, d)
    return tgt


def transformer_forward(params, ftr_maps, obj_queries, cfg):
    B, H, W, d = ftr_maps.shape
    N = obj_queries.shape[1]
    S = H * W

    # learned 2-D positional encoding (row/col embeddings, DETR style),
    # kept as a single [S, d] table (no B-times broadcast through HBM).
    pos = jnp.concatenate(
        [
            jnp.broadcast_to(params["col_embed"][:W][None, :, :], (H, W, d // 2)),
            jnp.broadcast_to(params["row_embed"][:H][:, None, :], (H, W, d // 2)),
        ],
        axis=-1,
    ).reshape(S, d).astype(BF16)
    qpos = params["query_embed"][:N].astype(BF16)

    # encoder
    mem = ftr_maps.reshape(B, S, d).astype(BF16)
    for lp in params["encoder_layers"]:
        mem = encoder_layer(mem, pos, lp, cfg)

    # decoder
    tgt = obj_queries.astype(BF16)
    for lp in params["decoder_layers"]:
        tgt = decoder_layer(tgt, qpos, mem, pos, lp, cfg)
    tgt = layernorm(tgt.reshape(B * N, d), params["dec_norm"], F32).reshape(B, N, d)
    return tgt


# ----------------------------------------------------------------------------
# Deterministic parameter initialization (weights stored bf16, biases/LN f32)
# ----------------------------------------------------------------------------
def _dense(key, shape, scale=0.02, dtype=BF16):
    return (scale * jax.random.normal(key, shape)).astype(dtype)


def _ln_params(d):
    return {"g": jnp.ones((1, d), F32), "b": jnp.zeros((1, d), F32)}


def _attn_params_self(key, d, Nh, dk, dv):
    kq, kk, kv_, ko = jax.random.split(key, 4)
    wq = _dense(kq, (d, Nh * dk))
    wk = _dense(kk, (d, Nh * dk))
    return {
        "Wqk": jnp.concatenate([wq, wk], axis=1),          # fused Q|K projection
        "bqk": jnp.zeros((1, 2 * Nh * dk), F32),
        "Wv": _dense(kv_, (d, Nh * dv)), "bv": jnp.zeros((1, Nh * dv), F32),
        "Wo": _dense(ko, (Nh * dv, d)), "bo": jnp.zeros((1, d), F32),
    }


def _attn_params_cross(key, d, Nh, dk, dv):
    kq, kk, kv_, ko = jax.random.split(key, 4)
    return {
        "Wq": _dense(kq, (d, Nh * dk)), "bq": jnp.zeros((1, Nh * dk), F32),
        "Wk": _dense(kk, (d, Nh * dk)), "bk": jnp.zeros((1, Nh * dk), F32),
        "Wv": _dense(kv_, (d, Nh * dv)), "bv": jnp.zeros((1, Nh * dv), F32),
        "Wo": _dense(ko, (Nh * dv, d)), "bo": jnp.zeros((1, d), F32),
    }


def _ffn_params(key, d, dff):
    k1, k2 = jax.random.split(key)
    return {
        "W1": _dense(k1, (d, dff)), "b1": jnp.zeros((1, dff), F32),
        "W2": _dense(k2, (dff, d)), "b2": jnp.zeros((1, d), F32),
    }


def init_params(key, cfg):
    d, Nh, dk, dv, dff = cfg["d"], cfg["Nh"], cfg["dk"], cfg["dv"], cfg["d_ffn"]
    n_keys = 3 + cfg["num_encoder_layers"] + cfg["num_decoder_layers"]
    keys = jax.random.split(key, n_keys)
    params = {
        "row_embed": _dense(keys[0], (cfg["H_max"], d // 2), scale=1.0, dtype=F32),
        "col_embed": _dense(keys[1], (cfg["W_max"], d // 2), scale=1.0, dtype=F32),
        "query_embed": _dense(keys[2], (cfg["N_max"], d), scale=1.0, dtype=F32),
        "encoder_layers": [],
        "decoder_layers": [],
        "dec_norm": _ln_params(d),
    }
    kidx = 3
    for _ in range(cfg["num_encoder_layers"]):
        k1, k2 = jax.random.split(keys[kidx]); kidx += 1
        params["encoder_layers"].append({
            "attn": _attn_params_self(k1, d, Nh, dk, dv),
            "ffn": _ffn_params(k2, d, dff),
            "ln1": _ln_params(d), "ln2": _ln_params(d),
        })
    for _ in range(cfg["num_decoder_layers"]):
        k1, k2, k3 = jax.random.split(keys[kidx], 3); kidx += 1
        params["decoder_layers"].append({
            "self_attn": _attn_params_self(k1, d, Nh, dk, dv),
            "cross_attn": _attn_params_cross(k2, d, Nh, dk, dv),
            "ffn": _ffn_params(k3, d, dff),
            "ln1": _ln_params(d), "ln2": _ln_params(d), "ln3": _ln_params(d),
        })
    return params


# ----------------------------------------------------------------------------
if __name__ == "__main__":
    cfg = dict(
        Nh=4, d=32, d_ffn=64,
        W_max=16, H_max=16, N_max=16,
        num_encoder_layers=2, num_decoder_layers=2,
        dk=32 // 4, dv=32 // 4,          # defaults: d // Nh
    )

    key = jax.random.PRNGKey(0)
    kp, kf, kq = jax.random.split(key, 3)

    params = init_params(kp, cfg)

    B, H, W, d, N = 2, 4, 4, cfg["d"], 8
    ftr_maps = jax.random.uniform(kf, (B, H, W, d), dtype=jnp.float32)
    obj_queries = jax.random.uniform(kq, (B, N, d), dtype=jnp.float32)

    out = transformer_forward(params, ftr_maps, obj_queries, cfg)
    out = jax.block_until_ready(out)

    assert out.shape == (B, N, d) and out.dtype == jnp.float32
    assert bool(jnp.all(jnp.isfinite(out)))
    print("KERNEL_OK")
</pallas_src>

<mosaic_0001>
module attributes {stable_mosaic.version = 11 : i64} {
  func.func @_self_proj_kernel(%arg0: i32, %arg1: i32, %arg2: memref<1x16x32xbf16, #tpu.memory_space<vmem>>, %arg3: memref<16x32xbf16, #tpu.memory_space<vmem>>, %arg4: memref<32x64xbf16, #tpu.memory_space<vmem>>, %arg5: memref<1x64xf32, #tpu.memory_space<vmem>>, %arg6: memref<32x32xbf16, #tpu.memory_space<vmem>>, %arg7: memref<1x32xf32, #tpu.memory_space<vmem>>, %arg8: memref<1x16x32xbf16, #tpu.memory_space<vmem>>, %arg9: memref<1x16x64xbf16, #tpu.memory_space<vmem>>) attributes {dimension_semantics = [#tpu.dimension_semantics<parallel>, #tpu.dimension_semantics<parallel>], iteration_bounds = array<i64: 2, 1>, scalar_prefetch = 0 : i64, scratch_operands = 0 : i64, tpu.core_type = #tpu.core_type<tc>, window_params = [{transform_indices = @transform_0, window_bounds = array<i64: 1, 16, 32>}, {transform_indices = @transform_1, window_bounds = array<i64: 16, 32>}, {pipeline_mode = #tpu.pipeline_mode<synchronous>, transform_indices = @transform_2, window_bounds = array<i64: 32, 64>}, {pipeline_mode = #tpu.pipeline_mode<synchronous>, transform_indices = @transform_3, window_bounds = array<i64: 1, 64>}, {pipeline_mode = #tpu.pipeline_mode<synchronous>, transform_indices = @transform_4, window_bounds = array<i64: 32, 32>}, {pipeline_mode = #tpu.pipeline_mode<synchronous>, transform_indices = @transform_5, window_bounds = array<i64: 1, 32>}, {transform_indices = @transform_6, window_bounds = array<i64: 1, 16, 32>}, {transform_indices = @transform_7, window_bounds = array<i64: 1, 16, 64>}]} {
    %c0 = arith.constant 0 : index
    %c0_0 = arith.constant 0 : index
    %c0_1 = arith.constant 0 : index
    %0 = vector.load %arg2[%c0, %c0_0, %c0_1] : memref<1x16x32xbf16, #tpu.memory_space<vmem>>, vector<1x16x32xbf16>
    %1 = vector.shape_cast %0 : vector<1x16x32xbf16> to vector<16x32xbf16>
    %2 = arith.extf %1 : vector<16x32xbf16> to vector<16x32xf32>
    %c0_2 = arith.constant 0 : index
    %c0_3 = arith.constant 0 : index
    %3 = vector.load %arg3[%c0_2, %c0_3] : memref<16x32xbf16, #tpu.memory_space<vmem>>, vector<16x32xbf16>
    %4 = arith.extf %3 : vector<16x32xbf16> to vector<16x32xf32>
    %5 = arith.addf %2, %4 : vector<16x32xf32>
    %6 = arith.truncf %5 : vector<16x32xf32> to vector<16x32xbf16>
    %c0_4 = arith.constant 0 : index
    %c0_5 = arith.constant 0 : index
    %7 = vector.load %arg4[%c0_4, %c0_5] : memref<32x64xbf16, #tpu.memory_space<vmem>>, vector<32x64xbf16>
    %cst = arith.constant dense<0.000000e+00> : vector<16x64xf32>
    %8 = tpu.matmul %6, %7, %cst {dimension_numbers = #tpu.dot_dimension_numbers<[1], [0], [0], [1], [0, 0, 1, 1], [], []>} : vector<16x32xbf16>, vector<32x64xbf16>, vector<16x64xf32> -> vector<16x64xf32>
    %c0_6 = arith.constant 0 : index
    %c0_7 = arith.constant 0 : index
    %9 = vector.load %arg5[%c0_6, %c0_7] : memref<1x64xf32, #tpu.memory_space<vmem>>, vector<1x64xf32>
    %10 = vector.broadcast %9 : vector<1x64xf32> to vector<16x64xf32>
    %11 = arith.addf %8, %10 : vector<16x64xf32>
    %12 = arith.truncf %2 : vector<16x32xf32> to vector<16x32xbf16>
    %c0_8 = arith.constant 0 : index
    %c0_9 = arith.constant 0 : index
    %13 = vector.load %arg6[%c0_8, %c0_9] : memref<32x32xbf16, #tpu.memory_space<vmem>>, vector<32x32xbf16>
    %cst_10 = arith.constant dense<0.000000e+00> : vector<16x32xf32>
    %14 = tpu.matmul %12, %13, %cst_10 {dimension_numbers = #tpu.dot_dimension_numbers<[1], [0], [0], [1], [0, 0, 1, 1], [], []>} : vector<16x32xbf16>, vector<32x32xbf16>, vector<16x32xf32> -> vector<16x32xf32>
    %c0_11 = arith.constant 0 : index
    %c0_12 = arith.constant 0 : index
    %15 = vector.load %arg7[%c0_11, %c0_12] : memref<1x32xf32, #tpu.memory_space<vmem>>, vector<1x32xf32>
    %16 = vector.broadcast %15 : vector<1x32xf32> to vector<16x32xf32>
    %17 = arith.addf %14, %16 : vector<16x32xf32>
    %18 = vector.extract_strided_slice %11 {offsets = [0, 0], sizes = [16, 32], strides = [1, 1]} : vector<16x64xf32> to vector<16x32xf32>
    %19 = arith.truncf %18 : vector<16x32xf32> to vector<16x32xbf16>
    %c0_13 = arith.constant 0 : index
    %c0_14 = arith.constant 0 : index
    %c0_15 = arith.constant 0 : index
    %20 = vector.load %arg8[%c0_13, %c0_14, %c0_15] : memref<1x16x32xbf16, #tpu.memory_space<vmem>>, vector<1x16x32xbf16>
    %21 = vector.shape_cast %20 : vector<1x16x32xbf16> to vector<16x32xbf16>
    %22 = vector.shape_cast %19 : vector<16x32xbf16> to vector<1x16x32xbf16>
    tpu.vector_store %arg8[%c0_13, %c0_14, %c0_15], %22 {strides = array<i32>} : memref<1x16x32xbf16, #tpu.memory_space<vmem>>, vector<1x16x32xbf16>,
    %23 = vector.extract_strided_slice %11 {offsets = [0, 32], sizes = [16, 32], strides = [1, 1]} : vector<16x64xf32> to vector<16x32xf32>
    %24 = arith.truncf %23 : vector<16x32xf32> to vector<16x32xbf16>
    %c0_16 = arith.constant 0 : index
    %c0_17 = arith.constant 0 : index
    %c0_18 = arith.constant 0 : index
    %25 = vector.load %arg9[%c0_16, %c0_17, %c0_18] : memref<1x16x64xbf16, #tpu.memory_space<vmem>>, vector<1x16x32xbf16>
    %26 = vector.shape_cast %25 : vector<1x16x32xbf16> to vector<16x32xbf16>
    %27 = vector.shape_cast %24 : vector<16x32xbf16> to vector<1x16x32xbf16>
    tpu.vector_store %arg9[%c0_16, %c0_17, %c0_18], %27 {strides = array<i32>} : memref<1x16x64xbf16, #tpu.memory_space<vmem>>, vector<1x16x32xbf16>,
    %28 = arith.truncf %17 : vector<16x32xf32> to vector<16x32xbf16>
    %c0_19 = arith.constant 0 : index
    %c0_20 = arith.constant 0 : index
    %c32 = arith.constant 32 : index
    %29 = vector.load %arg9[%c0_19, %c0_20, %c32] : memref<1x16x64xbf16, #tpu.memory_space<vmem>>, vector<1x16x32xbf16>
    %30 = vector.shape_cast %29 : vector<1x16x32xbf16> to vector<16x32xbf16>
    %31 = vector.shape_cast %28 : vector<16x32xbf16> to vector<1x16x32xbf16>
    tpu.vector_store %arg9[%c0_19, %c0_20, %c32], %31 {strides = array<i32>} : memref<1x16x64xbf16, #tpu.memory_space<vmem>>, vector<1x16x32xbf16>,
    return
  }
  func.func @transform_0(%arg0: i32, %arg1: i32) -> (i32, i32, i32) {
    %c0_i32 = arith.constant 0 : i32
    %c0_i32_0 = arith.constant 0 : i32
    return %arg0, %arg1, %c0_i32 : i32, i32, i32
  }
  func.func @transform_1(%arg0: i32, %arg1: i32) -> (i32, i32) {
    %c0_i32 = arith.constant 0 : i32
    %c0_i32_0 = arith.constant 0 : i32
    return %arg1, %c0_i32 : i32, i32
  }
  func.func @transform_2(%arg0: i32, %arg1: i32) -> (i32, i32) {
    %c0_i32 = arith.constant 0 : i32
    %c0_i32_0 = arith.constant 0 : i32
    %c0_i32_1 = arith.constant 0 : i32
    return %c0_i32, %c0_i32_0 : i32, i32
  }
  func.func @transform_3(%arg0: i32, %arg1: i32) -> (i32, i32) {
    %c0_i32 = arith.constant 0 : i32
    %c0_i32_0 = arith.constant 0 : i32
    %c0_i32_1 = arith.constant 0 : i32
    return %c0_i32, %c0_i32_0 : i32, i32
  }
  func.func @transform_4(%arg0: i32, %arg1: i32) -> (i32, i32) {
    %c0_i32 = arith.constant 0 : i32
    %c0_i32_0 = arith.constant 0 : i32
    %c0_i32_1 = arith.constant 0 : i32
    return %c0_i32, %c0_i32_0 : i32, i32
  }
  func.func @transform_5(%arg0: i32, %arg1: i32) -> (i32, i32) {
    %c0_i32 = arith.constant 0 : i32
    %c0_i32_0 = arith.constant 0 : i32
    %c0_i32_1 = arith.constant 0 : i32
    return %c0_i32, %c0_i32_0 : i32, i32
  }
  func.func @transform_6(%arg0: i32, %arg1: i32) -> (i32, i32, i32) {
    %c0_i32 = arith.constant 0 : i32
    %c0_i32_0 = arith.constant 0 : i32
    return %arg0, %arg1, %c0_i32 : i32, i32, i32
  }
  func.func @transform_7(%arg0: i32, %arg1: i32) -> (i32, i32, i32) {
    %c0_i32 = arith.constant 0 : i32
    %c0_i32_0 = arith.constant 0 : i32
    return %arg0, %arg1, %c0_i32 : i32, i32, i32
  }
}

</mosaic_0001>

<bundles_post_ra>
// kernel: tpu_custom_call.1
= control target key start
LH: loop header
LB: loop body
LE: loop exit
PB: predicated region body
PF: predicated region fallthrough
CT: control target
= control target key end

     0   :  { %s1386_s0 = inlined_call_operand.hbm [shape: bf16[2,16,32], index: 0, kind: input, shape index: {}]   ;;  %s1387_s1 = inlined_call_operand.hbm [shape: bf16[16,32], index: 1, kind: input, shape index: {}]   ;;  %s1388_s2 = inlined_call_operand.hbm [shape: bf16[32,64], index: 2, kind: input, shape index: {}]   ;;  %s1389_s3 = inlined_call_operand.vmem [shape: f32[1,64], index: 3, kind: input, shape index: {}]   ;;  %s1390_s4 = inlined_call_operand.hbm [shape: bf16[32,32], index: 4, kind: input, shape index: {}]   ;;  %s1391_s5 = inlined_call_operand.vmem [shape: f32[1,32], index: 5, kind: input, shape index: {}]   ;;  %s1392_s6 = inlined_call_operand.hbm [shape: bf16[2,16,32], index: 6, kind: output, shape index: {0}]   ;;  %s1393_s7 = inlined_call_operand.hbm [shape: bf16[2,16,64], index: 7, kind: output, shape index: {1}]  }
   0x1   :  { %1399 = sst [smem:[#allocation20_spill]] %s1387_s1 }
   0x2   :  { %1400 = sst [smem:[#allocation21_spill]] %s1388_s2 }
   0x3   :  { %1401 = sst [smem:[#allocation22_spill]] %s1390_s4 }
   0x4   :  { %13 = vsyncpa [#allocation3], 0 }
   0x5   :  { %15 = vsyncpa [#allocation3 + $0x1], 0 }
   0x6   :  { %16 = vsyncpa [#allocation6], 0 }
   0x7   :  { %17 = vsyncpa [#allocation9], 0 }
   0x8   :  { %18 = vsyncpa [#allocation4], 0 }
   0x9   :  { %20 = vsyncpa [#allocation4 + $0x1], 0 }
   0xa   :  { %21 = vsyncpa [#allocation12], 0 }
   0xb   :  { %23 = vsyncpa [#allocation12 + $0x1], 0  ;;  %s1166_s24 = smov 0   ;;  %s1168_s25 = smov 0  }
   0xc   :  { %s1170_s26 = smov 0   ;;  %s1172_s27 = smov 0  }
   0xd   :  { %s1174_s28 = smov 0   ;;  %s1176_s29 = smov 0  }
   0xe LB: > { %1402 = sst [smem:[#allocation18_spill]] %s1115_s29  ;;  %s708_s30 = sadd.s32 4294967295, %s1115_s29   ;;  %s1115_s29 = sphi %s1176_s29, %s29_s29   ;;  %s1111_s28 = sphi %s1174_s28, %s1423_s28   ;;  %s1107_s27 = sphi %s1172_s27, %s1422_s27   ;;  %s1103_s26 = sphi %s1170_s26, %s1421_s26   ;;  %s1099_s25 = sphi %s1168_s25, %s1420_s25   ;;  %s1095_s24 = sphi %s1166_s24, %s1419_s24  }
   0xf   : > { %s709_s8 = sadd.s32 4294967294, %s1115_s29   ;;  %p63_p0 = scmp.ne.s32.totalorder %s1099_s25, %s1095_s24 }
  0x10   : > { %p1200_p1 = scmp.eq.s32.totalorder %s708_s30, 0  ;;  %p1204_p2 = scmp.eq.s32.totalorder %s708_s30, 1 }
  0x11   : > { %p205_p3 = scmp.eq.s32.totalorder %s709_s8, 1  ;;  %p710_p5 = scmp.ge.s32.totalorder %s1115_s29, 1 }
  0x12   : > { %p1210_p4 = por %p1200_p1, %p63_p0  ;;  %p240_p7 = scmp.lt.s32.totalorder %s1115_s29, 3 }
  0x13   : > { %p1215_p6 = por %p205_p3, %p63_p0  ;;  %s1407_s1 = sld [smem:[#allocation20_spill]] }
  0x14   : > { %p1223_p8 = pnand %p710_p5, %p240_p7  ;;  %s1117_s17 = smov [#allocation5]  }
  0x15   : > { %s256_s18 = sshll.u32 %s1117_s17, 4  ;;  %p714_p11 = scmp.ge.s32.totalorder %s1115_s29, 2  ;;  %s257_s18 = int_to_ptr.vmem [resolvable:$true] %s256_s18 }
  0x16   : > { %p785_p9 = pneg %p1223_p8  ;;  %s1410_s2 = sld [smem:[#allocation21_spill]] }
  0x17   : > { %s1394_s23 = smov 64   ;;  %s1395_s30 = smov 4  }
  0x18   : > { %p1231_p10 = pnand %p785_p9, %p1200_p1  ;;  %s1120_s8 = smov [#allocation7]  }
  0x19   : > { %s254_s15 = sshll.u32 %s1407_s1, 4  ;;  %s270_s13 = sshll.u32 %s1120_s8, 4  ;;  %s255_s15 = int_to_ptr.hbm [resolvable:$true] %s254_s15  ;;  %s271_s13 = int_to_ptr.vmem [resolvable:$true] %s270_s13 }
  0x1a   : > { %788 = dma.hbm_to_vmem [thread:$0]  (!%p1231_p10), %s255_s15, 128, %s257_s18, [#allocation6], %s1394_s23, %s1394_s23, %s1395_s30  }
  0x1b   : > { %s1411_s4 = sld [smem:[#allocation22_spill]]  ;;  %s1121_s21 = smov [#allocation8]  }
  0x1c   : > { %s268_s22 = sshll.u32 %s1410_s2, 4  ;;  %s287_s1 = sshll.u32 %s1121_s21, 4  ;;  %s269_s22 = int_to_ptr.hbm [resolvable:$true] %s268_s22  ;;  %s288_s1 = int_to_ptr.vmem [resolvable:$true] %s287_s1 }
  0x1d   : > { %791 = dma.hbm_to_vmem [thread:$0]  (!%p1231_p10), %s269_s22, 256, %s271_s13, [#allocation6], %s1394_s23, %s1394_s23, %s1395_s30  }
  0x1e   : > { %s41_s15 = sadd.s32 1, %s1111_s28  ;;  %s50_s18 = sadd.s32 1, %s1103_s26 }
  0x1f   : > { %p43_p12 = scmp.ge.s32.totalorder %s41_s15, 2  ;;  %p57_p13 = scmp.ne.s32.totalorder %s1103_s26, %s1099_s25 }
  0x20   : > { %p58_p0 = scmp.eq.s32.totalorder %s1115_s29, 0  ;;  %p809_p7 = scmp.lt.s32.totalorder %s1115_s29, 2 }
  0x21   : > { %s285_s20 = sshll.u32 %s1411_s4, 4  ;;  %s1425_s15 = smov (%p43_p12, %s41_s15), 0  ;;  %s286_s20 = int_to_ptr.hbm [resolvable:$true] %s285_s20 }
  0x22   : > { %794 = dma.hbm_to_vmem [thread:$0]  (!%p1231_p10), %s286_s20, 256, %s288_s1, [#allocation9], %s1394_s23, %s1394_s23, %s1395_s30  }
  0x23   : > { %1412 = sst [smem:[#allocation19_spill]] %s1425_s15  ;;  %p1264_p3 = por %p58_p0, %p57_p13 }
  0x24   : > { %p1270_p5 = por %p1204_p2, %p57_p13  ;;  %s45_s8 = ssub.s32 %s1111_s28, %s1425_s15 }
  0x25   : > { %p48_p9 = scmp.eq.s32.totalorder %s45_s8, 0  ;;  %s304_s1 = sand.u32 1, %s1103_s26  }
  0x26   : > { %s715_s13 = sshll.u32 %s304_s1, 3  ;;  %s755_s17 = sshll.u32 %s1111_s28, 3 }
  0x27   : > { %s1279_s14 = scalar_select %p48_p9, %s1103_s26, %s50_s18  }
  0x28   : > { %s315_s23 = scalar_lea.hbm %s1386_s0, %s755_s17  ;;  %s308_s30 = scalar_lea.vmem [#allocation2], %s715_s13 }
  0x29   : > { %s318_s2 = sshll.u32 %s308_s30, 4  ;;  %s316_s10 = sshll.u32 %s315_s23, 4  ;;  %s319_s2 = int_to_ptr.vmem [resolvable:$true] %s318_s2  ;;  %s317_s10 = int_to_ptr.hbm [resolvable:$true] %s316_s10 }
  0x2a   : > { %p796_p2 = pnand %p809_p7, %p1264_p3  ;;  %s305_s4 = scalar_lea.sflag [#allocation3], %s304_s1 }
  0x2b   : > { %s1415_s15 = smov 4   ;;  %s1416_s29 = smov 64  }
  0x2c   : > { %798 = dma.hbm_to_vmem [thread:$0]  (!%p796_p2), %s317_s10, 128, %s319_s2, %s305_s4, %s1416_s29, %s1416_s29, %s1415_s15  }
  0x2d   : > { %330 = sbr.rel (%p1223_p8) target bundleno = 320 (0x140), region = 44  ;;  %s1293_s18 = sand.u32 (!%p1223_p8), 1, %s1099_s25  }
  0x2e   : > { %s1296_s30 = sshll.u32 (!%p1223_p8), %s1293_s18, 3  ;;  %s333_s23 = scalar_lea.sflag (!%p1223_p8), [#allocation3], %s1293_s18 }
  0x2f   : > { %s336_s22 = scalar_lea.vmem (!%p1223_p8), [#allocation2], %s1296_s30 }
  0x32   : > { %1074 = dma.done.wait (%p1210_p4), %s333_s23, 128  }
  0x33   : > { %1076 = vsyncadd (%p1210_p4), %s333_s23, 4294967168 }
  0x34   : > { %1078 = dma.done.wait (%p1200_p1), [#allocation6], 384  }
  0x35   : > { %1080 = vsyncadd (%p1200_p1), [#allocation6], 4294966912 }
  0x36   : > { %1082 = dma.done.wait (%p1200_p1), [#allocation9], 256  }
  0x37   : > { %1084 = vsyncadd (%p1200_p1), [#allocation9], 4294967040  ;;  %v758_v0 = vld [vmem:[#allocation7 + $0x8] sm:$0xff]  ;;  %v760_v1 = vld [vmem:[#allocation8 + $0x8] sm:$0xff]  ;;  %vm424_vm0 = vcmask 261120   ;;  %s761_s11 = sshll.u32 %s1107_s27, 3 }
  0x38   : > { %v393_v2 = vld [vmem:[%s336_s22] sm:$0xff]   ;;  %v764_v3 = vld [vmem:[#allocation5] sm:$0xff]   ;;  %434 = vmatpush.bf16.msra.mxu0 %v758_v0  ;;  %476 = vmatpush.bf16.msra.mxu1 %v760_v1  ;;  %v757_v4 = vld [vmem:[#allocation7] sm:$0xff]  ;;  %vm486_vm1 = vcmask 257024   ;;  %s531_s8 = scalar_lea.hbm %s1392_s6, %s761_s11  ;;  %s1122_s1 = smov 32  }
  0x39   : > { %v759_v5 = vld [vmem:[#allocation8] sm:$0xff]  ;;  %v395_v6 = vunpack.c.l.bf16 %v393_v2  ;;  %v396_v7 = vunpack.c.h.bf16 %v393_v2  ;;  %v765_v8 = vunpack.c.l.bf16 %v764_v3  ;;  %v766_v9 = vunpack.c.h.bf16 %v764_v3  ;;  %v871_v14 = vld [vmem:[%s1389_s3] ss:$0 sm:$0xff]  ;;  %s1123_s13 = smov 96   ;;  %s380_s17 = scalar_lea.vmem [#allocation10], %s1296_s30 }
  0x3a   : > { %v756_v12 = vld [vmem:[%s336_s22] sm:$0xff]  ;;  %s532_s20 = sshll.u32 %s380_s17, 4  ;;  %s534_s21 = sshll.u32 %s531_s8, 4  ;;  %s533_s20 = int_to_ptr.vmem [resolvable:$true] %s532_s20  ;;  %s535_s21 = int_to_ptr.hbm [resolvable:$true] %s534_s21 }
  0x3b   : > { %v401_v10 = vadd.f32 %v765_v8, %v395_v6  ;;  %v402_v11 = vadd.f32 %v766_v9, %v396_v7  ;;  %v872_v15 = vld [vmem:[%s1391_s5] ss:$0 sm:$0xff]  ;;  %s513_s10 = scalar_lea.sflag [#allocation4], %s1293_s18  ;;  %s1007_s23 = sshra.s32 %s535_s21, 4  ;;  %s1008_s23 = int_to_ptr.hbm [resolvable:$true] %s1007_s23 }
  0x3c   : > { %435 = vmatpush.bf16.msra.mxu0 %v757_v4  ;;  %477 = vmatpush.bf16.msra.mxu1 %v759_v5  ;;  %s1009_s22 = scalar_lea.hbm %s1008_s23, 8  ;;  %s1013_s29 = scalar_lea.hbm %s1392_s6, 16 }
  0x3d   : > { %v403_v13 = vpack.c.bf16 %v402_v11, %v401_v10  ;;  %p1010_p1 = scmp.ne.s32.totalorder %s1008_s23, %s1009_s22  ;;  %p1014_p10 = scmp.lt.s32.totalorder %s1008_s23, %s1392_s6 }
  0x3e   : > { %p1015_p12 = scmp.lt.s32.totalorder %s1013_s29, %s1009_s22 }
  0x3f   : > { %733 = vmatmul.msk.bf16.vlgmr.msra.gmra.mxu0 %vm424_vm0, %v403_v13  ;;  %746 = vmatmul.msk.bf16.vlgmr.msra.gmra.mxu1 %vm424_vm0, %v756_v12  ;;  %p1011_p4 = pnand %p1010_p1, %p1270_p5 }
  0x40   : > { %p1016_p13 = por %p1015_p12, %p1014_p10 }
  0x41   : > { %p1012_p8 = pneg %p1011_p4 }
  0x43   : > { %p1017_p0 = pnand %p1016_p13, %p1012_p8 }
  0xbc   : > { %v437_v16 = vpop.f32.mrf.mxu0  ;;  %v479_v17 = vpop.f32.mrf.mxu1 }
  0xbd   : > { %v438_v18 = vadd.f32 %v871_v14, %v437_v16  ;;  %v480_v19 = vadd.f32 %v872_v15, %v479_v17 }
  0xbf   : > { %v484_v20 = vpack.c.bf16 %v438_v18, %v438_v18  ;;  %v499_v21 = vpack.c.bf16 %v480_v19, %v480_v19 }
  0xc1   : > { %503 = vrot.lane.b32.xlu1 %v499_v21, %s1122_s1  ;;  %491 = vrot.lane.b32.xlu0 %v484_v20, %s1123_s13  ;;  %487 = vst.msk [vmem:[%s380_s17] sm:$0xf] %vm486_vm1, %v484_v20 }
  0xc4   : > { %v439_v22 = vpop.f32.mrf.mxu0  ;;  %v481_v23 = vpop.f32.mrf.mxu1 }
  0xc5   : > { %v440_v24 = vadd.f32 %v871_v14, %v439_v22  ;;  %v482_v25 = vadd.f32 %v872_v15, %v481_v23 }
  0xc7   : > { %v485_v26 = vpack.c.bf16 %v440_v24, %v440_v24  ;;  %v500_v27 = vpack.c.bf16 %v482_v25, %v482_v25 }
  0xc9   : > { %505 = vrot.lane.b32.xlu1 %v500_v27, %s1122_s1  ;;  %493 = vrot.lane.b32.xlu0 %v485_v26, %s1123_s13  ;;  %488 = vst.msk [vmem:[%s380_s17 + $0x4] sm:$0xf] %vm486_vm1, %v485_v26 }
  0xca   : > { %1020 = shalt.err (!%p1017_p0)
}
  0xcb   : > { %s1124_s15 = smov 64   ;;  %s1125_s8 = smov 4   ;;  %vm509_vm2 = vcmask 519424  }
  0xcc   : > { %781 = dma.vmem_to_hbm [thread:$0]  (%p1270_p5), %s533_s20, 128, %s535_s21, %s513_s10, %s1124_s15, %s1124_s15, %s1125_s8  }
  0xcd   : > { %s387_s1 = scalar_lea.vmem [#allocation11], %s1296_s30  ;;  %s550_s23 = scalar_lea.hbm %s1393_s7, %s761_s11 }
  0xce   : > { %s551_s22 = sshll.u32 %s387_s1, 4  ;;  %s553_s2 = sshll.u32 %s550_s23, 4  ;;  %s552_s22 = int_to_ptr.vmem [resolvable:$true] %s551_s22  ;;  %s554_s2 = int_to_ptr.hbm [resolvable:$true] %s553_s2 }
  0xcf   : > { %s518_s20 = scalar_lea.sflag [#allocation12], %s1293_s18  ;;  %s1035_s30 = sshra.s32 %s554_s2, 4  ;;  %s1036_s30 = int_to_ptr.hbm [resolvable:$true] %s1035_s30 }
  0xd0   : > { %s1037_s21 = scalar_lea.hbm %s1036_s30, 8  ;;  %s1041_s11 = scalar_lea.hbm %s1393_s7, 16 }
  0xd1   : > { %p1038_p3 = scmp.ne.s32.totalorder %s1036_s30, %s1037_s21  ;;  %p1042_p2 = scmp.lt.s32.totalorder %s1036_s30, %s1393_s7 }
  0xd2   : > { %p1043_p1 = scmp.lt.s32.totalorder %s1041_s11, %s1037_s21 }
  0xd3   : > { %p1039_p7 = pnand %p1038_p3, %p1270_p5 }
  0xd4   : > { %p1044_p4 = por %p1043_p1, %p1042_p2 }
  0xd5   : > { %p1040_p9 = pneg %p1039_p7 }
  0xd7   : > { %p1045_p8 = pnand %p1044_p4, %p1040_p9 }
 0x133   : > { %v504_v28 = vpop.permute.xlu1 %503  ;;  %v492_v29 = vpop.permute.xlu0 %491 }
 0x134   : > { %497 = vst.msk [vmem:[%s387_s1] sm:$0xf] %vm486_vm1, %v492_v29 }
 0x135   : > { %510 = vst.msk [vmem:[%s387_s1] sm:$0xf] %vm509_vm2, %v504_v28 }
 0x13b   : > { %v506_v30 = vpop.permute.xlu1 %505  ;;  %v494_v31 = vpop.permute.xlu0 %493 }
 0x13c   : > { %498 = vst.msk [vmem:[%s387_s1 + $0x4] sm:$0xf] %vm486_vm1, %v494_v31 }
 0x13d   : > { %511 = vst.msk [vmem:[%s387_s1 + $0x4] sm:$0xf] %vm509_vm2, %v506_v30 }
 0x13e   : > { %1048 = shalt.err (!%p1045_p8)
}
 0x13f   : > { %782 = dma.vmem_to_hbm [thread:$0]  (%p1270_p5), %s552_s22, 128, %s554_s2, %s518_s20, %s1124_s15, %s1124_s15, %s1125_s8  }
 0x140 PF: > { %s1417_s18 = sld [smem:[#allocation18_spill]]  ;;  %s568_s9 = sand.u32 1, %s1095_s24  }
 0x141   : > { %p800_p10 = pnand %p714_p11, %p1215_p6  ;;  %s569_s16 = scalar_lea.sflag [#allocation4], %s568_s9 }
 0x143   : > { %p801_p12 = pneg %p800_p10 }
 0x145   : > { %1086 = dma.done.wait (%p801_p12), %s569_s16, 128  }
 0x146   : > { %1088 = vsyncadd (%p801_p12), %s569_s16, 4294967168  ;;  %s579_s1 = scalar_lea.sflag [#allocation12], %s568_s9 }
 0x147   : > { %1090 = dma.done.wait (%p801_p12), %s579_s1, 128  }
 0x148   : > { %1092 = vsyncadd (%p801_p12), %s579_s1, 4294967168  ;;  %s29_s29 = sadd.s32 1, %s1417_s18   ;;  %s1418_s19 = sld [smem:[#allocation19_spill]] }
 0x149   : > { %p26_p13 = scmp.ge.s32.totalorder %s29_s29, 4   ;;  %s1419_s24 = smov %s1099_s25 }
 0x14a   : > { %s1420_s25 = smov %s1103_s26  ;;  %s1421_s26 = smov %s1279_s14 }
 0x14b   : > { %s1422_s27 = smov %s1111_s28  ;;  %28 = sbr.rel (!%p26_p13) target bundleno = 14 (0xe), region = 119 }
 0x14e   : > { %s1423_s28 = smov %s1418_s19 }
 0x150   :  { %585 = vsyncpa [#allocation3], 1 }
 0x151   :  { %587 = vsyncpa [#allocation3 + $0x1], 1 }
 0x152   :  { %588 = vsyncpa [#allocation6], 1 }
 0x153   :  { %589 = vsyncpa [#allocation9], 1 }
 0x154   :  { %590 = vsyncpa [#allocation4], 1 }
 0x155   :  { %592 = vsyncpa [#allocation4 + $0x1], 1 }
 0x156   :  { %593 = vsyncpa [#allocation12], 1 }
 0x157   :  { %595 = vsyncpa [#allocation12 + $0x1], 1 }

</bundles_post_ra>
